<compile_context>
chip_gen: v7x
topology: tpu7x:2x2x1
jax: 0.10.0
libtpu: 0.0.40
codegen_flags: <defaults>
</compile_context>

<pallas_src>
import numpy as np
import jax
import jax.numpy as jnp
from jax import lax
from jax.experimental import pallas as pl
from jax.experimental.pallas import tpu as pltpu


def _round_up(x, m):
    return ((x + m - 1) // m) * m


def _pick_rows(C, R, itemsize, has_weight, requested):
    """Rows (of 128 lanes each) per grid step, and the in-body chunk height."""
    if R <= 8:
        return R, R                          # single tiny block; chunk == block
    if requested is not None:
        ts = min(int(requested), 4096)
    else:
        try:
            vmem_bytes = pltpu.get_tpu_info().vmem_capacity_bytes
        except Exception:
            vmem_bytes = 64 << 20            # v7x per-TC physical size; conservative
        budget = min(vmem_bytes // 3, 24 << 20)   # headroom for pipeline + compiler
        # per 128-lane row: gt+pred double-buffered (+ weight double-buffered)
        per_row = 2 * 2 * C * 128 * itemsize + (2 * 128 * 4 if has_weight else 0)
        ts = budget // max(per_row, 1)
        ts = min(ts, 2048)                   # ~4 MiB / input / step at C=4 f32
    ts = max(8, min(ts, R))
    ts = (ts // 8) * 8
    return ts, 8


def _make_kernel(C, TS, CHUNK, HW, has_weight, ragged, bf16_products):
    """Blocks: gt/pred (C, TS, 128), weight (TS, 128), out (1, 1), acc (CHUNK, 128)."""
    n_chunks = TS // CHUNK

    def body(gt_ref, pred_ref, w_ref, out_ref, acc_ref):
        s = pl.program_id(1)
        j = pl.program_id(2)
        jp = pl.num_programs(2)
        global_j = s * jp + j                # global block index along the row axis

        @pl.when(j == 0)
        def _init():
            acc_ref[...] = jnp.zeros(acc_ref.shape, acc_ref.dtype)

        def chunk_term(c, flat_local):
            row0 = c * CHUNK
            r0 = row0 if isinstance(row0, int) else pl.multiple_of(row0, CHUNK)
            dot = pm2 = gm2 = None
            # Channel reduction as C unrolled dense adds over (CHUNK,128) planes.
            for ci in range(C):
                g = gt_ref[ci, pl.ds(r0, CHUNK), :]
                p = pred_ref[ci, pl.ds(r0, CHUNK), :]
                if bf16_products:
                    d = (p * g).astype(jnp.float32)
                    pp = (p * p).astype(jnp.float32)
                    gg = (g * g).astype(jnp.float32)
                else:
                    gf = g.astype(jnp.float32)
                    pf = p.astype(jnp.float32)
                    d, pp, gg = pf * gf, pf * pf, gf * gf
                dot = d if dot is None else dot + d
                pm2 = pp if pm2 is None else pm2 + pp
                gm2 = gg if gm2 is None else gm2 + gg
            # 1 - dot/(sqrt(pm2)*sqrt(gm2)) == 1 - dot * rsqrt(pm2*gm2).
            # No eps, matching PyTorch 0/0 semantics.
            term = 1.0 - dot * lax.rsqrt(pm2 * gm2)          # (CHUNK, 128)
            if has_weight:
                term = term * w_ref[pl.ds(r0, CHUNK), :].astype(jnp.float32)
            if flat_local is not None:
                # Mask padded / out-of-bounds pixels AFTER all arithmetic
                # (NaN/Inf from garbage data is discarded by the select).
                limit = HW - (global_j * TS + row0) * 128
                term = jnp.where(flat_local < limit, term, 0.0)
            return term

        def run(masked):
            flat_local = None
            if masked:
                flat_local = (
                    lax.broadcasted_iota(jnp.int32, (CHUNK, 128), 0) * 128
                    + lax.broadcasted_iota(jnp.int32, (CHUNK, 128), 1))
            acc = jnp.zeros((CHUNK, 128), jnp.float32)
            if n_chunks <= 8:
                for t in range(n_chunks):
                    acc = acc + chunk_term(t, flat_local)
            else:
                unroll = 8
                n_outer = n_chunks // unroll

                def outer(o, a):
                    base = o * unroll
                    for u in range(unroll):
                        a = a + chunk_term(base + u, flat_local)
                    return a

                acc = lax.fori_loop(0, n_outer, outer, acc)
                for t in range(n_outer * unroll, n_chunks):   # static tail
                    acc = acc + chunk_term(t, flat_local)
            return acc

        if ragged:
            # Only grid steps whose block extends past HW pay for the mask.
            needs_mask = (global_j + 1) * (TS * 128) > HW

            @pl.when(jnp.logical_not(needs_mask))
            def _interior():
                acc_ref[...] += run(False)

            @pl.when(needs_mask)
            def _boundary():
                acc_ref[...] += run(True)
        else:
            acc_ref[...] += run(False)

        @pl.when(j == jp - 1)
        def _finalize():
            out_ref[...] = jnp.sum(acc_ref[...], keepdims=True)   # (1, 1)

    if has_weight:
        def kernel(gt_ref, pred_ref, w_ref, out_ref, acc_ref):
            body(gt_ref, pred_ref, w_ref, out_ref, acc_ref)
    else:
        def kernel(gt_ref, pred_ref, out_ref, acc_ref):
            body(gt_ref, pred_ref, None, out_ref, acc_ref)
    return kernel


def lmk_loss(gt, pred, weight=None, *, tile_rows=None, spatial_splits=None):
    """gt, pred: (N, C, H, W).  weight: optional (N, H, W).  Returns scalar loss."""
    N, C, H, W = gt.shape
    HW = H * W
    HW_pad = _round_up(HW, 128)
    R = HW_pad // 128

    gt3 = gt.reshape(N, C, HW)
    pred3 = pred.reshape(N, C, HW)
    w3 = weight.reshape(N, HW) if weight is not None else None
    if HW_pad != HW:
        # Rare path (HW not a multiple of 128): zero-pad the flat spatial axis so
        # the (R, 128) re-layout is possible; padded lanes are masked in-kernel.
        gt3 = jnp.pad(gt3, ((0, 0), (0, 0), (0, HW_pad - HW)))
        pred3 = jnp.pad(pred3, ((0, 0), (0, 0), (0, HW_pad - HW)))
        if w3 is not None:
            w3 = jnp.pad(w3, ((0, 0), (0, HW_pad - HW)))
    gt4 = gt3.reshape(N, C, R, 128)
    pred4 = pred3.reshape(N, C, R, 128)
    w4 = w3.reshape(N, R, 128) if w3 is not None else None
    has_weight = w4 is not None

    itemsize = max(jnp.dtype(gt.dtype).itemsize, jnp.dtype(pred.dtype).itemsize)
    TS, CHUNK = _pick_rows(C, R, itemsize, has_weight, tile_rows)
    grid_j_total = pl.cdiv(R, TS)

    # v7x dual-TC: split the spatial reduction across a second parallel axis
    # when the batch axis alone can't keep both TensorCores busy.
    if spatial_splits is None:
        NS = 2 if (N < 2 or N % 2 == 1) else 1
    else:
        NS = max(1, int(spatial_splits))
    NS = min(NS, grid_j_total)
    JP = pl.cdiv(grid_j_total, NS)
    ragged = (NS * JP * TS * 128) != HW

    def row_block(s_idx, j_idx):
        gj = s_idx * JP + j_idx
        if NS * JP != grid_j_total:
            # Fully out-of-range steps read the last valid block (clamped) and
            # contribute exactly zero via the in-kernel mask.
            gj = jnp.minimum(gj, grid_j_total - 1)
        return gj

    in_specs = [
        pl.BlockSpec((None, C, TS, 128), lambda n, s, j: (n, 0, row_block(s, j), 0)),
        pl.BlockSpec((None, C, TS, 128), lambda n, s, j: (n, 0, row_block(s, j), 0)),
    ]
    args = [gt4, pred4]
    if has_weight:
        in_specs.append(
            pl.BlockSpec((None, TS, 128), lambda n, s, j: (n, row_block(s, j), 0)))
        args.append(w4)

    bf16_products = (gt.dtype == jnp.bfloat16 and pred.dtype == jnp.bfloat16)
    kernel = _make_kernel(C, TS, CHUNK, HW, has_weight, ragged, bf16_products)

    w_item = jnp.dtype(weight.dtype).itemsize if has_weight else 0
    est = (2 * 2 * C * TS * 128 * itemsize        # gt+pred, double-buffered
           + 2 * TS * 128 * w_item                # weight, double-buffered
           + CHUNK * 128 * 4)                     # accumulator scratch
    vmem_limit = int(min(max(est + (4 << 20), 16 << 20), 40 << 20))

    partials = pl.pallas_call(
        kernel,
        out_shape=jax.ShapeDtypeStruct((N, NS, 1, 1), jnp.float32),
        grid_spec=pltpu.PrefetchScalarGridSpec(
            num_scalar_prefetch=0,
            grid=(N, NS, JP),
            in_specs=in_specs,
            out_specs=pl.BlockSpec((None, None, 1, 1), lambda n, s, j: (n, s, 0, 0)),
            scratch_shapes=[pltpu.VMEM((CHUNK, 128), jnp.float32)],
        ),
        compiler_params=pltpu.CompilerParams(
            dimension_semantics=("parallel", "parallel", "arbitrary"),
            vmem_limit_bytes=vmem_limit,
        ),
    )(*args)

    return jnp.sum(partials) / jnp.float32(N)


def _lmk_loss_ref(gt, pred, weight=None):
    dot = jnp.sum(pred * gt, axis=1)
    pm = jnp.sqrt(jnp.sum(pred * pred, axis=1))
    gm = jnp.sqrt(jnp.sum(gt * gt, axis=1))
    term = 1.0 - dot / (pm * gm)
    if weight is not None:
        term = term * weight
    return jnp.sum(term) / gt.shape[0]


def _check(got, want, msg):
    got = np.asarray(got)
    want = np.asarray(want)
    assert np.allclose(got, want, rtol=1e-4, atol=1e-4), (msg, got, want)


if __name__ == "__main__":
    key = jax.random.PRNGKey(0)
    keys = jax.random.split(key, 10)

    # Main case: N=2, C=4, 16x16 spatial (HW=256 -> 2 rows of 128 lanes).
    N, C, H, W = 2, 4, 16, 16
    gt = jax.random.normal(keys[0], (N, C, H, W), dtype=jnp.float32)
    pred = jax.random.normal(keys[1], (N, C, H, W), dtype=jnp.float32)
    weight = jax.random.uniform(keys[2], (N, H, W), dtype=jnp.float32)

    loss = jax.block_until_ready(lmk_loss(gt, pred))
    _check(loss, _lmk_loss_ref(gt, pred), "no-weight")

    loss_w = jax.block_until_ready(lmk_loss(gt, pred, weight))
    _check(loss_w, _lmk_loss_ref(gt, pred, weight), "weighted")

    # Ragged spatial extent (HW=320, not a multiple of 128): pad + mask path.
    H2, W2 = 16, 20
    gt_r = jax.random.normal(keys[3], (N, C, H2, W2), dtype=jnp.float32)
    pred_r = jax.random.normal(keys[4], (N, C, H2, W2), dtype=jnp.float32)
    weight_r = jax.random.uniform(keys[5], (N, H2, W2), dtype=jnp.float32)
    loss_r = jax.block_until_ready(lmk_loss(gt_r, pred_r, weight_r))
    _check(loss_r, _lmk_loss_ref(gt_r, pred_r, weight_r), "ragged")

    # Multi-step reduction + explicit 2-way spatial split (v7x dual-TC path).
    N3, H3, W3 = 1, 64, 64                   # HW=4096 -> R=32 rows; tile_rows=8 -> 4 blocks
    gt_s = jax.random.normal(keys[6], (N3, C, H3, W3), dtype=jnp.float32)
    pred_s = jax.random.normal(keys[7], (N3, C, H3, W3), dtype=jnp.float32)
    weight_s = jax.random.uniform(keys[8], (N3, H3, W3), dtype=jnp.float32)
    loss_s = jax.block_until_ready(
        lmk_loss(gt_s, pred_s, weight_s, tile_rows=8, spatial_splits=2))
    _check(loss_s, _lmk_loss_ref(gt_s, pred_s, weight_s), "split")

    # Ragged + multi-step (partial last row block), no weight, auto split (N=1).
    H4, W4 = 40, 40                          # HW=1600 -> pad to 1664 (R=13)
    gt_g = jax.random.normal(keys[9], (1, C, H4, W4), dtype=jnp.float32)
    pred_g = jax.random.normal(keys[0], (1, C, H4, W4), dtype=jnp.float32)
    loss_g = jax.block_until_ready(lmk_loss(gt_g, pred_g, tile_rows=8))
    _check(loss_g, _lmk_loss_ref(gt_g, pred_g), "ragged-multistep")

    print("KERNEL_OK")
</pallas_src>

<mosaic_0001>
module attributes {stable_mosaic.version = 11 : i64} {
  func.func @kernel(%arg0: i32, %arg1: i32, %arg2: i32, %arg3: memref<1x4x2x128xf32, #tpu.memory_space<vmem>>, %arg4: memref<1x4x2x128xf32, #tpu.memory_space<vmem>>, %arg5: memref<1x1x1x1xf32, #tpu.memory_space<vmem>>, %arg6: memref<2x128xf32, #tpu.memory_space<vmem>>) attributes {dimension_semantics = [#tpu.dimension_semantics<parallel>, #tpu.dimension_semantics<parallel>, #tpu.dimension_semantics<arbitrary>], iteration_bounds = array<i64: 2, 1, 1>, scalar_prefetch = 0 : i64, scratch_operands = 1 : i64, tpu.core_type = #tpu.core_type<tc>, window_params = [{transform_indices = @transform_0, window_bounds = array<i64: 1, 4, 2, 128>}, {transform_indices = @transform_1, window_bounds = array<i64: 1, 4, 2, 128>}, {transform_indices = @transform_2, window_bounds = array<i64: 1, 1, 1, 1>}]} {
    %c0_i32 = arith.constant 0 : i32
    %0 = arith.cmpi eq, %arg2, %c0_i32 : i32
    %1 = arith.extui %0 : i1 to i32
    %c0_i32_0 = arith.constant 0 : i32
    %2 = arith.cmpi ne, %1, %c0_i32_0 : i32
    scf.if %2 {
      %cst_36 = arith.constant 0.000000e+00 : f32
      %53 = vector.broadcast %cst_36 : f32 to vector<2x128xf32>
      %c0_37 = arith.constant 0 : index
      %c0_38 = arith.constant 0 : index
      %54 = vector.load %arg6[%c0_37, %c0_38] : memref<2x128xf32, #tpu.memory_space<vmem>>, vector<2x128xf32>
      tpu.vector_store %arg6[%c0_37, %c0_38], %53 {strides = array<i32>} : memref<2x128xf32, #tpu.memory_space<vmem>>, vector<2x128xf32>,
    } else {
    }
    %c0 = arith.constant 0 : index
    %c0_1 = arith.constant 0 : index
    %3 = vector.load %arg6[%c0, %c0_1] : memref<2x128xf32, #tpu.memory_space<vmem>>, vector<2x128xf32>
    %cst = arith.constant 0.000000e+00 : f32
    %4 = vector.broadcast %cst : f32 to vector<2x128xf32>
    %c0_2 = arith.constant 0 : index
    %c0_3 = arith.constant 0 : index
    %c0_4 = arith.constant 0 : index
    %c0_5 = arith.constant 0 : index
    %5 = vector.load %arg3[%c0_2, %c0_3, %c0_4, %c0_5] : memref<1x4x2x128xf32, #tpu.memory_space<vmem>>, vector<1x1x2x128xf32>
    %6 = vector.shape_cast %5 : vector<1x1x2x128xf32> to vector<2x128xf32>
    %c0_6 = arith.constant 0 : index
    %c0_7 = arith.constant 0 : index
    %c0_8 = arith.constant 0 : index
    %c0_9 = arith.constant 0 : index
    %7 = vector.load %arg4[%c0_6, %c0_7, %c0_8, %c0_9] : memref<1x4x2x128xf32, #tpu.memory_space<vmem>>, vector<1x1x2x128xf32>
    %8 = vector.shape_cast %7 : vector<1x1x2x128xf32> to vector<2x128xf32>
    %9 = arith.mulf %8, %6 : vector<2x128xf32>
    %10 = arith.mulf %8, %8 : vector<2x128xf32>
    %11 = arith.mulf %6, %6 : vector<2x128xf32>
    %c0_10 = arith.constant 0 : index
    %c1 = arith.constant 1 : index
    %c0_11 = arith.constant 0 : index
    %c0_12 = arith.constant 0 : index
    %12 = vector.load %arg3[%c0_10, %c1, %c0_11, %c0_12] : memref<1x4x2x128xf32, #tpu.memory_space<vmem>>, vector<1x1x2x128xf32>
    %13 = vector.shape_cast %12 : vector<1x1x2x128xf32> to vector<2x128xf32>
    %c0_13 = arith.constant 0 : index
    %c1_14 = arith.constant 1 : index
    %c0_15 = arith.constant 0 : index
    %c0_16 = arith.constant 0 : index
    %14 = vector.load %arg4[%c0_13, %c1_14, %c0_15, %c0_16] : memref<1x4x2x128xf32, #tpu.memory_space<vmem>>, vector<1x1x2x128xf32>
    %15 = vector.shape_cast %14 : vector<1x1x2x128xf32> to vector<2x128xf32>
    %16 = arith.mulf %15, %13 : vector<2x128xf32>
    %17 = arith.mulf %15, %15 : vector<2x128xf32>
    %18 = arith.mulf %13, %13 : vector<2x128xf32>
    %19 = arith.addf %9, %16 : vector<2x128xf32>
    %20 = arith.addf %10, %17 : vector<2x128xf32>
    %21 = arith.addf %11, %18 : vector<2x128xf32>
    %c0_17 = arith.constant 0 : index
    %c2 = arith.constant 2 : index
    %c0_18 = arith.constant 0 : index
    %c0_19 = arith.constant 0 : index
    %22 = vector.load %arg3[%c0_17, %c2, %c0_18, %c0_19] : memref<1x4x2x128xf32, #tpu.memory_space<vmem>>, vector<1x1x2x128xf32>
    %23 = vector.shape_cast %22 : vector<1x1x2x128xf32> to vector<2x128xf32>
    %c0_20 = arith.constant 0 : index
    %c2_21 = arith.constant 2 : index
    %c0_22 = arith.constant 0 : index
    %c0_23 = arith.constant 0 : index
    %24 = vector.load %arg4[%c0_20, %c2_21, %c0_22, %c0_23] : memref<1x4x2x128xf32, #tpu.memory_space<vmem>>, vector<1x1x2x128xf32>
    %25 = vector.shape_cast %24 : vector<1x1x2x128xf32> to vector<2x128xf32>
    %26 = arith.mulf %25, %23 : vector<2x128xf32>
    %27 = arith.mulf %25, %25 : vector<2x128xf32>
    %28 = arith.mulf %23, %23 : vector<2x128xf32>
    %29 = arith.addf %19, %26 : vector<2x128xf32>
    %30 = arith.addf %20, %27 : vector<2x128xf32>
    %31 = arith.addf %21, %28 : vector<2x128xf32>
    %c0_24 = arith.constant 0 : index
    %c3 = arith.constant 3 : index
    %c0_25 = arith.constant 0 : index
    %c0_26 = arith.constant 0 : index
    %32 = vector.load %arg3[%c0_24, %c3, %c0_25, %c0_26] : memref<1x4x2x128xf32, #tpu.memory_space<vmem>>, vector<1x1x2x128xf32>
    %33 = vector.shape_cast %32 : vector<1x1x2x128xf32> to vector<2x128xf32>
    %c0_27 = arith.constant 0 : index
    %c3_28 = arith.constant 3 : index
    %c0_29 = arith.constant 0 : index
    %c0_30 = arith.constant 0 : index
    %34 = vector.load %arg4[%c0_27, %c3_28, %c0_29, %c0_30] : memref<1x4x2x128xf32, #tpu.memory_space<vmem>>, vector<1x1x2x128xf32>
    %35 = vector.shape_cast %34 : vector<1x1x2x128xf32> to vector<2x128xf32>
    %36 = arith.mulf %35, %33 : vector<2x128xf32>
    %37 = arith.mulf %35, %35 : vector<2x128xf32>
    %38 = arith.mulf %33, %33 : vector<2x128xf32>
    %39 = arith.addf %29, %36 : vector<2x128xf32>
    %40 = arith.addf %30, %37 : vector<2x128xf32>
    %41 = arith.addf %31, %38 : vector<2x128xf32>
    %42 = arith.mulf %40, %41 : vector<2x128xf32>
    %43 = math.rsqrt %42 : vector<2x128xf32>
    %44 = arith.mulf %39, %43 : vector<2x128xf32>
    %cst_31 = arith.constant 1.000000e+00 : f32
    %45 = vector.broadcast %cst_31 : f32 to vector<2x128xf32>
    %46 = arith.subf %45, %44 : vector<2x128xf32>
    %47 = arith.addf %4, %46 : vector<2x128xf32>
    %48 = arith.addf %3, %47 : vector<2x128xf32>
    %c0_32 = arith.constant 0 : index
    %c0_33 = arith.constant 0 : index
    %49 = vector.load %arg6[%c0_32, %c0_33] : memref<2x128xf32, #tpu.memory_space<vmem>>, vector<2x128xf32>
    tpu.vector_store %arg6[%c0_32, %c0_33], %48 {strides = array<i32>} : memref<2x128xf32, #tpu.memory_space<vmem>>, vector<2x128xf32>,
    %c0_i32_34 = arith.constant 0 : i32
    %50 = arith.cmpi eq, %arg2, %c0_i32_34 : i32
    %51 = arith.extui %50 : i1 to i32
    %c0_i32_35 = arith.constant 0 : i32
    %52 = arith.cmpi ne, %51, %c0_i32_35 : i32
    scf.if %52 {
      %c0_36 = arith.constant 0 : index
      %c0_37 = arith.constant 0 : index
      %53 = vector.load %arg6[%c0_36, %c0_37] : memref<2x128xf32, #tpu.memory_space<vmem>>, vector<2x128xf32>
      %54 = vector.shape_cast %53 : vector<2x128xf32> to vector<1x2x128xf32>
      %cst_38 = arith.constant dense<0.000000e+00> : vector<1xf32>
      %55 = vector.multi_reduction <add>, %54, %cst_38 [1, 2] : vector<1x2x128xf32> to vector<1xf32>
      %56 = vector.shape_cast %55 : vector<1xf32> to vector<1x1x1xf32>
      %57 = vector.extract %56[0, 0, 0] : f32 from vector<1x1x1xf32>
      %58 = vector.broadcast %57 : f32 to vector<1x1xf32>
      %c0_39 = arith.constant 0 : index
      %c0_40 = arith.constant 0 : index
      %c0_41 = arith.constant 0 : index
      %c0_42 = arith.constant 0 : index
      %59 = vector.load %arg5[%c0_39, %c0_40, %c0_41, %c0_42] : memref<1x1x1x1xf32, #tpu.memory_space<vmem>>, vector<1x1x1x1xf32>
      %60 = vector.shape_cast %59 : vector<1x1x1x1xf32> to vector<1x1xf32>
      %61 = vector.shape_cast %58 : vector<1x1xf32> to vector<1x1x1x1xf32>
      tpu.vector_store %arg5[%c0_39, %c0_40, %c0_41, %c0_42], %61 {strides = array<i32>} : memref<1x1x1x1xf32, #tpu.memory_space<vmem>>, vector<1x1x1x1xf32>,
    } else {
    }
    return
  }
  func.func @transform_0(%arg0: i32, %arg1: i32, %arg2: i32) -> (i32, i32, i32, i32) {
    %c1_i32 = arith.constant 1 : i32
    %0 = arith.muli %arg1, %c1_i32 : i32
    %1 = arith.addi %0, %arg2 : i32
    %c0_i32 = arith.constant 0 : i32
    %c0_i32_0 = arith.constant 0 : i32
    %c0_i32_1 = arith.constant 0 : i32
    return %arg0, %c0_i32, %1, %c0_i32_0 : i32, i32, i32, i32
  }
  func.func @transform_1(%arg0: i32, %arg1: i32, %arg2: i32) -> (i32, i32, i32, i32) {
    %c1_i32 = arith.constant 1 : i32
    %0 = arith.muli %arg1, %c1_i32 : i32
    %1 = arith.addi %0, %arg2 : i32
    %c0_i32 = arith.constant 0 : i32
    %c0_i32_0 = arith.constant 0 : i32
    %c0_i32_1 = arith.constant 0 : i32
    return %arg0, %c0_i32, %1, %c0_i32_0 : i32, i32, i32, i32
  }
  func.func @transform_2(%arg0: i32, %arg1: i32, %arg2: i32) -> (i32, i32, i32, i32) {
    %c0_i32 = arith.constant 0 : i32
    %c0_i32_0 = arith.constant 0 : i32
    %c0_i32_1 = arith.constant 0 : i32
    return %arg0, %arg1, %c0_i32, %c0_i32_0 : i32, i32, i32, i32
  }
}

</mosaic_0001>

<bundles_post_ra>
// kernel: tpu_custom_call.1
= control target key start
LH: loop header
LB: loop body
LE: loop exit
PB: predicated region body
PF: predicated region fallthrough
CT: control target
= control target key end

     0   :  { %7 = vsyncpa [#allocation4], 0  ;;  %s826_s0 = inlined_call_operand.hbm [shape: f32[2,4,2,128], index: 0, kind: input, shape index: {}]   ;;  %s827_s1 = inlined_call_operand.hbm [shape: f32[2,4,2,128], index: 1, kind: input, shape index: {}]   ;;  %s828_s2 = inlined_call_operand.vmem [shape: f32[2,1,1,1], index: 2, kind: output, shape index: {}]  }
   0x1   :  { %9 = vsyncpa [#allocation4 + $0x1], 0 }
   0x2   :  { %10 = vsyncpa [#allocation6], 0 }
   0x3   :  { %12 = vsyncpa [#allocation6 + $0x1], 0  ;;  %s642_s9 = smov 0   ;;  %s644_s10 = smov 0  }
   0x4   :  { %s646_s11 = smov 0   ;;  %s648_s12 = smov 0  }
   0x5   :  { %s650_s13 = smov 0   ;;  %s652_s14 = smov 0  }
   0x6 LB: > { %s416_s15 = sadd.s32 4294967295, %s620_s14   ;;  %s37_s16 = sadd.s32 1, %s616_s13  ;;  %s620_s14 = sphi %s652_s14, %s18_s14   ;;  %s616_s13 = sphi %s650_s13, %s839_s13   ;;  %s612_s12 = sphi %s648_s12, %s838_s12   ;;  %s608_s11 = sphi %s646_s11, %s837_s11   ;;  %s604_s10 = sphi %s644_s10, %s836_s10   ;;  %s600_s9 = sphi %s642_s9, %s835_s9  }
   0x7   : > { %p39_p0 = scmp.ge.s32.totalorder %s37_s16, 2  ;;  %s48_s17 = sadd.s32 1, %s608_s11 }
   0x8   : > { %p55_p1 = scmp.ne.s32.totalorder %s608_s11, %s604_s10  ;;  %p56_p2 = scmp.eq.s32.totalorder %s620_s14, 0 }
   0x9   : > { %s841_s16 = smov (%p39_p0, %s37_s16), 0  ;;  %p61_p4 = scmp.ne.s32.totalorder %s604_s10, %s600_s9 }
   0xa   : > { %p678_p3 = por %p56_p2, %p55_p1  ;;  %s43_s19 = ssub.s32 %s616_s13, %s841_s16 }
   0xb   : > { %p62_p5 = scmp.eq.s32.totalorder %s416_s15, 0  ;;  %p46_p6 = scmp.eq.s32.totalorder %s43_s19, 0 }
   0xc   : > { %p452_p8 = scmp.lt.s32.totalorder %s620_s14, 2  ;;  %s694_s22 = sand.u32 1, %s608_s11  }
   0xd   : > { %p685_p7 = por %p62_p5, %p61_p4  ;;  %s437_s23 = sshll.u32 %s616_s13, 7 }
   0xe   : > { %s691_s21 = scalar_select %p46_p6, %s608_s11, %s48_s17  }
   0xf   : > { %s831_s20 = scalar_select %p685_p7, 1, 0 }
  0x10   : > { %s420_s24 = sshll.u32 %s694_s22, 3  ;;  %s703_s27 = scalar_lea.hbm %s826_s0, %s437_s23 }
  0x11   : > { %s147_s28 = scalar_lea.vmem [#allocation3], %s420_s24  ;;  %p709_p9 = pnand %p452_p8, %p678_p3 }
  0x12   : > { %s156_s29 = sshll.u32 %s147_s28, 4  ;;  %s144_s3 = scalar_lea.sflag [#allocation4], %s694_s22  ;;  %s713_s29 = int_to_ptr.vmem [resolvable:$true] %s156_s29 }
  0x13   : > { %s506_s4 = scalar_lea.hbm %s703_s27, 128  ;;  %p508_p11 = pneg %p709_p9 }
  0x14   : > { %p507_p10 = scmp.ne.s32.totalorder %s703_s27, %s506_s4  ;;  %s511_s7 = scalar_lea.hbm %s826_s0, 256 }
  0x15   : > { %p512_p0 = scmp.lt.u32.totalorder %s703_s27, %s826_s0  ;;  %p513_p1 = scmp.lt.u32.totalorder %s511_s7, %s506_s4 }
  0x16   : > { %p509_p12 = pnand %p508_p11, %p507_p10  ;;  %p515_p3 = scmp.lt.u32.totalorder %s506_s4, %s703_s27 }
  0x17   : > { %p514_p2 = por %p513_p1, %p512_p0 }
  0x18   : > { %p510_p13 = pneg %p509_p12 }
  0x19   : > { %p516_p4 = por %p515_p3, %p514_p2 }
  0x1b   : > { %p517_p5 = pnand %p516_p4, %p510_p13 }
  0x1d   : > { %520 = shalt.err (!%p517_p5)
}
  0x1e   : > { %s521_s15 = scalar_lea.vmem %s713_s29, 128  ;;  %s622_s17 = smov [#allocation3]  }
  0x1f   : > { %p522_p6 = scmp.ne.s32.totalorder %s713_s29, %s521_s15  ;;  %s526_s18 = sshll.u32 %s622_s17, 4  ;;  %s527_s18 = int_to_ptr.vmem [resolvable:$false] %s526_s18 }
  0x20   : > { %s528_s19 = scalar_lea.vmem %s527_s18, 256  ;;  %p529_p12 = scmp.lt.s32.totalorder %s713_s29, %s527_s18 }
  0x21   : > { %p524_p8 = pnand %p522_p6, %p508_p11  ;;  %p530_p0 = scmp.lt.s32.totalorder %s528_s19, %s521_s15 }
  0x23   : > { %p525_p10 = pneg %p524_p8  ;;  %p531_p1 = por %p530_p0, %p529_p12 }
  0x25   : > { %p532_p2 = pnand %p531_p1, %p525_p10 }
  0x27   : > { %535 = shalt.err (!%p532_p2)
}
  0x28   : > { %s623_s25 = smov 32   ;;  %s624_s26 = smov 2  }
  0x29   : > { %448 = dma.hbm_to_vmem [thread:$0]  (!%p709_p9), %s703_s27, 128, %s713_s29, %s144_s3, %s623_s25, %s623_s25, %s624_s26  }
  0x2a   : > { %p426_p13 = scmp.ge.s32.totalorder %s620_s14, 1  ;;  %p187_p3 = scmp.lt.s32.totalorder %s620_s14, 3 }
  0x2b   : > { %s757_s6 = scalar_lea.hbm %s827_s1, %s437_s23  ;;  %s170_s7 = scalar_lea.vmem [#allocation5], %s420_s24 }
  0x2c   : > { %p748_p4 = pnand %p426_p13, %p187_p3  ;;  %s179_s8 = sshll.u32 %s170_s7, 4  ;;  %s761_s8 = int_to_ptr.vmem [resolvable:$true] %s179_s8 }
  0x2d   : > { %s167_s27 = scalar_lea.sflag [#allocation6], %s694_s22  ;;  %s536_s29 = scalar_lea.hbm %s757_s6, 128 }
  0x2e   : > { %p537_p5 = scmp.ne.s32.totalorder %s757_s6, %s536_s29  ;;  %s541_s23 = scalar_lea.hbm %s827_s1, 256 }
  0x2f   : > { %p542_p10 = scmp.lt.u32.totalorder %s757_s6, %s827_s1  ;;  %p543_p12 = scmp.lt.u32.totalorder %s541_s23, %s536_s29 }
  0x30   : > { %p539_p6 = pnand %p537_p5, %p508_p11  ;;  %p545_p1 = scmp.lt.u32.totalorder %s536_s29, %s757_s6 }
  0x31   : > { %p544_p0 = por %p543_p12, %p542_p10 }
  0x32   : > { %p540_p8 = pneg %p539_p6 }
  0x33   : > { %p546_p2 = por %p545_p1, %p544_p0 }
  0x35   : > { %p547_p13 = pnand %p546_p2, %p540_p8 }
  0x37   : > { %550 = shalt.err (!%p547_p13)
}
  0x38   : > { %s551_s24 = scalar_lea.vmem %s761_s8, 128  ;;  %s625_s18 = smov [#allocation5]  }
  0x39   : > { %p552_p3 = scmp.ne.s32.totalorder %s761_s8, %s551_s24  ;;  %s556_s19 = sshll.u32 %s625_s18, 4  ;;  %s557_s19 = int_to_ptr.vmem [resolvable:$false] %s556_s19 }
  0x3a   : > { %s558_s4 = scalar_lea.vmem %s557_s19, 256  ;;  %p559_p7 = scmp.lt.s32.totalorder %s761_s8, %s557_s19 }
  0x3b   : > { %p554_p5 = pnand %p552_p3, %p508_p11  ;;  %p560_p10 = scmp.lt.s32.totalorder %s558_s4, %s551_s24 }
  0x3d   : > { %p555_p6 = pneg %p554_p5  ;;  %p561_p12 = por %p560_p10, %p559_p7 }
  0x3f   : > { %p562_p0 = pnand %p561_p12, %p555_p6 }
  0x41   : > { %565 = shalt.err (!%p562_p0)
}
  0x42   : > { %451 = dma.hbm_to_vmem [thread:$0]  (!%p709_p9), %s757_s6, 128, %s761_s8, %s167_s27, %s623_s25, %s623_s25, %s624_s26  }
  0x43   : > { %191 = sbr.rel (%p748_p4) target bundleno = 321 (0x141), region = 28  ;;  %s193_s5 = sand.u32 (!%p748_p4), 1, %s604_s10  }
  0x44   : > { %s427_s7 = sshll.u32 (!%p748_p4), %s193_s5, 3  ;;  %s194_s29 = scalar_lea.sflag (!%p748_p4), [#allocation4], %s193_s5 }
  0x45   : > { %s197_s3 = scalar_lea.vmem (!%p748_p4), [#allocation3], %s427_s7  ;;  %p834_p7 = scmp.ne.s32.totalorder (!%p748_p4), %s831_s20, 0 }
  0x4a   : > { %591 = dma.done.wait (%p834_p7), %s194_s29, 128  }
  0x4b   : > { %593 = vsyncadd (%p834_p7), %s194_s29, 4294967168  ;;  %s203_s30 = scalar_lea.sflag [#allocation6], %s193_s5  ;;  %s206_s22 = scalar_lea.vmem [#allocation5], %s427_s7 }
  0x4c   : > { %595 = dma.done.wait (%p834_p7), %s203_s30, 128  }
  0x4d   : > { %597 = vsyncadd (%p834_p7), %s203_s30, 4294967168  ;;  %v626_v0 = vmov 0.0   ;;  %v247_v1 = vld [vmem:[%s197_s3] sm:$0x3]  ;;  %v248_v2 = vld [vmem:[%s206_s22] sm:$0x3] }
  0x4e   : > { %245 = vst [vmem:[#allocation2] sm:$0x3] %v626_v0  ;;  %v429_v3 = vld [vmem:[%s197_s3 + $0x2] sm:$0x3]  ;;  %v250_v4 = vmul.f32 %v248_v2, %v248_v2  ;;  %v251_v5 = vmul.f32 %v247_v1, %v247_v1  ;;  %v430_v6 = vld [vmem:[%s206_s22 + $0x2] sm:$0x3]  ;;  %v249_v21 = vmul.f32 %v248_v2, %v247_v1 }
  0x4f   : > { %v258_v7 = vmul.f32 %v429_v3, %v429_v3  ;;  %v431_v8 = vld [vmem:[%s197_s3 + $0x4] sm:$0x3]  ;;  %v257_v9 = vmul.f32 %v430_v6, %v430_v6  ;;  %v432_v10 = vld [vmem:[%s206_s22 + $0x4] sm:$0x3]  ;;  %v433_v12 = vld [vmem:[%s197_s3 + $0x6] sm:$0x3]  ;;  %v256_v22 = vmul.f32 %v430_v6, %v429_v3 }
  0x50   : > { %v268_v11 = vmul.f32 %v431_v8, %v431_v8  ;;  %v434_v13 = vld [vmem:[%s206_s22 + $0x6] sm:$0x3]  ;;  %v267_v15 = vmul.f32 %v432_v10, %v432_v10  ;;  %v278_v18 = vmul.f32 %v433_v12, %v433_v12  ;;  %v266_v27 = vmul.f32 %v432_v10, %v431_v8  ;;  %p235_p9 = scmp.lt.s32.totalorder %s612_s12, 1 }
  0x51   : > { %v261_v14 = vadd.f32 %v258_v7, %v251_v5  ;;  %v260_v16 = vadd.f32 %v257_v9, %v250_v4  ;;  %v277_v17 = vmul.f32 %v434_v13, %v434_v13  ;;  %v259_v26 = vadd.f32 %v256_v22, %v249_v21 }
  0x52   : > { %v276_v29 = vmul.f32 %v434_v13, %v433_v12  ;;  %vm293_vm0 = vcmask 1041408   ;;  %s843_s12 = smov (!%p235_p9, %s612_s12), 1  ;;  %vm305_vm1 = vcmask 0  }
  0x53   : > { %v271_v19 = vadd.f32 %v268_v11, %v261_v14  ;;  %v270_v20 = vadd.f32 %v267_v15, %v260_v16  ;;  %v269_v28 = vadd.f32 %v266_v27, %v259_v26  ;;  %s240_s26 = scalar_lea.vmem %s828_s2, %s843_s12 }
  0x55   : > { %v281_v23 = vadd.f32 %v278_v18, %v271_v19  ;;  %v280_v24 = vadd.f32 %v277_v17, %v270_v20  ;;  %v279_v30 = vadd.f32 %v276_v29, %v269_v28  ;;  %v246_v33 = vld [vmem:[#allocation2] sm:$0x3] }
  0x57   : > { %v282_v25 = vmul.f32 %v281_v23, %v280_v24 }
  0x59   : > { %504 = vrsqrt.f32 %v282_v25 }
  0x63   : > { %v505_v31 = vpop.eup %504 }
  0x64   : > { %v284_v32 = vmul.f32 %v505_v31, %v279_v30 }
  0x66   : > { %v285_v34 = vsub.f32 1.0, %v284_v32 }
  0x68   : > { %v287_v35 = vadd.f32 %v285_v34, %v246_v33 }
  0x6a   : > { %288 = vst [vmem:[#allocation2] sm:$0x3] %v287_v35 }
  0x71   : > { %v292_v36 = vld [vmem:[#allocation2] sm:$0x3] }
  0x72   : > { %v294_v37 = vsel %vm293_vm0, %v292_v36, 0.0 }
  0x73   : > { %295 = vadd.xlane.f32.xlu0 %v294_v37 }
 0x100   : > { %v296_v38 = vpop.xlane.xlu0 %295 }
 0x101   : > { %v297_v39 = vrot.slane %v296_v38, 4 }
 0x103   : > { %v298_v40 = vadd.f32 %v297_v39, %v296_v38 }
 0x105   : > { %v299_v41 = vrot.slane %v298_v40, 2 }
 0x107   : > { %v300_v42 = vadd.f32 %v299_v41, %v298_v40 }
 0x109   : > { %v301_v43 = vrot.slane %v300_v42, 1 }
 0x10b   : > { %v302_v44 = vadd.f32 %v301_v43, %v300_v42 }
 0x10d   : > { %439 = vpush %v302_v44 }
 0x13e   : > { %s440_s28 = spop %439 }
 0x13f   : > { %v304_v45 = vstv %s440_s28 }
 0x140   : > { %306 = vst.msk [vmem:[%s240_s26] sm:$0x1] %vm305_vm1, %v304_v45 }
 0x141 PF: > { %s18_s14 = sadd.s32 1, %s620_s14   ;;  %s835_s9 = smov %s604_s10 }
 0x142   : > { %p15_p11 = scmp.ge.s32.totalorder %s18_s14, 4   ;;  %s836_s10 = smov %s608_s11 }
 0x143   : > { %s837_s11 = smov %s691_s21  ;;  %s838_s12 = smov %s616_s13 }
 0x144   : > { %s839_s13 = smov %s841_s16  ;;  %17 = sbr.rel (!%p15_p11) target bundleno = 6 (0x6), region = 95 }
 0x14b   :  { %330 = vsyncpa [#allocation4], 1 }
 0x14c   :  { %332 = vsyncpa [#allocation4 + $0x1], 1 }
 0x14d   :  { %333 = vsyncpa [#allocation6], 1 }
 0x14e   :  { %335 = vsyncpa [#allocation6 + $0x1], 1 }

</bundles_post_ra>
